<compile_context>
chip_gen: v7x
topology: tpu7x:2x2x1
jax: 0.10.0
libtpu: 0.0.40
codegen_flags: <defaults>
</compile_context>

<pallas_src>
import functools

import jax
import jax.numpy as jnp
from jax.experimental import pallas as pl
from jax.experimental.pallas import tpu as pltpu


def critic_kernel(x_ref, w1_ref, b1_ref, w2_ref, b2_ref, w3_ref, b3_ref, o_ref,
                  *, mxu_bf16):
    H = w2_ref.shape[0]
    f32 = jnp.float32
    hi = jax.lax.Precision.HIGHEST

    x = x_ref[...]                                                  # (1, TB)

    # fc_1 + ReLU: K=1 matmul == broadcast outer product -> VPU only.
    h1 = jnp.maximum(w1_ref[...] * x + b1_ref[...], 0.0)           # (H, TB)

    # fc_2 + ReLU: the only real matmul -> MXU, f32 accumulation.
    if mxu_bf16:
        h2 = jnp.dot(w2_ref[...].astype(jnp.bfloat16),
                     h1.astype(jnp.bfloat16),
                     preferred_element_type=f32)
    else:
        h2 = jnp.dot(w2_ref[...], h1, preferred_element_type=f32, precision=hi)
    h2 = jnp.maximum(h2 + b2_ref[...], 0.0)                         # (H, TB)

    # fc_3: N=1 matmul. Bias is a scalar read from SMEM.
    if H <= 256:
        # Small H: VPU multiply + cross-sublane (XLU) reduce, exact f32.
        out = jnp.sum(h2 * w3_ref[...], axis=0, keepdims=True)      # (1, TB)
    else:
        # Large H: relieve the VALU slot -- contract on the MXU instead.
        lhs = w3_ref[...].astype(jnp.bfloat16) if mxu_bf16 else w3_ref[...]
        rhs = h2.astype(jnp.bfloat16) if mxu_bf16 else h2
        out = jax.lax.dot_general(
            lhs, rhs,
            dimension_numbers=(((0,), (0,)), ((), ())),
            preferred_element_type=f32,
            precision=None if mxu_bf16 else hi)                     # (1, TB)

    o_ref[...] = out + b3_ref[0, 0]                                 # (1, TB)


def critic_forward(x, params, *, batch_tile=2048, mxu_bf16=False,
                   core_parallel=False):
    """x: (B, 1) float32 -> (B, 1) float32. Same semantics as the torch Critic."""
    assert batch_tile % 128 == 0, "batch_tile must be a multiple of 128 lanes"
    B = x.shape[0]
    H = params["w1"].shape[0]

    # Lane-dense batch tile: multiple of 128, H-aware (keep the two (H, TB) f32
    # temporaries h1/h2 under ~4 MiB), and no larger than the 128-padded batch.
    tb_cap_h = max(128, ((4 << 20) // max(8 * H, 1)) // 128 * 128)
    TB = min(batch_tile, tb_cap_h, 128 * pl.cdiv(B, 128))
    Bp = TB * pl.cdiv(B, TB)

    # (B, 1) -> (1, B) is a free reshape of contiguous data (no HBM pass).
    x_row = x.astype(jnp.float32).reshape(1, B)
    if Bp != B:
        # Ragged tail only: pad columns are zeros and sliced off afterwards.
        x_row = jnp.pad(x_row, ((0, 0), (0, Bp - B)))

    const = lambda i: (0, 0)                 # grid-invariant -> resident in VMEM
    resident = dict(pipeline_mode=pl.Buffered(1))   # single buffer, single fetch

    # Explicit scoped-VMEM budget (defaults: 16 MiB v5e, 32 MiB v6e/v7x), capped
    # at 64 MiB so it is valid on every generation (v7x physical VMEM = 64 MiB).
    est = 4 * (H * H + 4 * H * 128) + 2 * (2 * 8 * TB * 4) + 2 * H * TB * 4
    vmem_limit = int(min(64 << 20, max(32 << 20, 2 * est)))

    sems = (pltpu.CORE_PARALLEL,) if core_parallel else (pltpu.PARALLEL,)

    out_row = pl.pallas_call(
        functools.partial(critic_kernel, mxu_bf16=mxu_bf16),
        out_shape=jax.ShapeDtypeStruct((1, Bp), jnp.float32),
        grid=(Bp // TB,),
        in_specs=[
            pl.BlockSpec((1, TB), lambda i: (0, i)),               # x (streamed)
            pl.BlockSpec((H, 1), const, **resident),               # w1 (H, 1)
            pl.BlockSpec((H, 1), const, **resident),               # b1 (H, 1)
            pl.BlockSpec((H, H), const, **resident),               # w2 (H, H)
            pl.BlockSpec((H, 1), const, **resident),               # b2 (H, 1)
            pl.BlockSpec((H, 1), const, **resident),               # w3 (H, 1)
            pl.BlockSpec(memory_space=pltpu.MemorySpace.SMEM),     # b3 scalar
        ],
        out_specs=pl.BlockSpec((1, TB), lambda i: (0, i)),
        compiler_params=pltpu.CompilerParams(
            dimension_semantics=sems,
            vmem_limit_bytes=vmem_limit,
        ),
    )(
        x_row,
        params["w1"], params["b1"],
        params["w2"], params["b2"],
        params["w3"], params["b3"],
    )

    if Bp != B:
        out_row = out_row[:, :B]
    return out_row.reshape(B, 1)


def init_critic_params(key, num_hidden):
    """torch.nn.Linear-style init: U(-1/sqrt(fan_in), 1/sqrt(fan_in)).

    Layout: w1 (H,1), w2 (H,H) are torch (out, in); w3 is stored as (H,1)
    (transposed torch (1,H)); biases are column vectors (H,1) / (1,1).
    """
    k1, k2, k3, k4, k5, k6 = jax.random.split(key, 6)

    def unif(k, shape, fan_in):
        bound = 1.0 / jnp.sqrt(jnp.float32(fan_in))
        return jax.random.uniform(k, shape, jnp.float32, -bound, bound)

    H = num_hidden
    return {
        "w1": unif(k1, (H, 1), 1),
        "b1": unif(k2, (H, 1), 1),
        "w2": unif(k3, (H, H), H),
        "b2": unif(k4, (H, 1), H),
        "w3": unif(k5, (H, 1), H),
        "b3": unif(k6, (1, 1), H),
    }


def critic_reference(x, params):
    """Pure-JAX reference in standard (batch, features) layout (f32 math)."""
    hi = jax.lax.Precision.HIGHEST
    h1 = jnp.maximum(x * params["w1"].T + params["b1"].T, 0.0)            # (B, H)
    h2 = jnp.maximum(jnp.dot(h1, params["w2"].T, precision=hi)
                     + params["b2"].T, 0.0)                               # (B, H)
    return jnp.dot(h2, params["w3"], precision=hi) + params["b3"]         # (B, 1)


if __name__ == "__main__":
    key = jax.random.PRNGKey(0)
    k_x, k_p = jax.random.split(key)

    batch = 8
    num_hidden = 32

    x = jax.random.normal(k_x, (batch, 1), dtype=jnp.float32)
    params = init_critic_params(k_p, num_hidden)

    out = jax.block_until_ready(critic_forward(x, params))
    ref = critic_reference(x, params)

    assert out.shape == (batch, 1)
    assert jnp.allclose(out, ref, atol=1e-5, rtol=1e-5), float(jnp.max(jnp.abs(out - ref)))

    print("KERNEL_OK")
</pallas_src>

<mosaic_0001>
module attributes {stable_mosaic.version = 11 : i64} {
  func.func @critic_kernel(%arg0: i32, %arg1: memref<1x128xf32, #tpu.memory_space<vmem>>, %arg2: memref<32x1xf32, #tpu.memory_space<vmem>>, %arg3: memref<32x1xf32, #tpu.memory_space<vmem>>, %arg4: memref<32x32xf32, #tpu.memory_space<vmem>>, %arg5: memref<32x1xf32, #tpu.memory_space<vmem>>, %arg6: memref<32x1xf32, #tpu.memory_space<vmem>>, %arg7: memref<1x1xf32, #tpu.memory_space<smem>>, %arg8: memref<1x128xf32, #tpu.memory_space<vmem>>) attributes {dimension_semantics = [#tpu.dimension_semantics<parallel>], iteration_bounds = array<i64: 1>, scalar_prefetch = 0 : i64, scratch_operands = 0 : i64, tpu.core_type = #tpu.core_type<tc>, window_params = [{transform_indices = @transform_0, window_bounds = array<i64: 1, 128>}, {pipeline_mode = #tpu.pipeline_mode<synchronous>, transform_indices = @transform_1, window_bounds = array<i64: 32, 1>}, {pipeline_mode = #tpu.pipeline_mode<synchronous>, transform_indices = @transform_2, window_bounds = array<i64: 32, 1>}, {pipeline_mode = #tpu.pipeline_mode<synchronous>, transform_indices = @transform_3, window_bounds = array<i64: 32, 32>}, {pipeline_mode = #tpu.pipeline_mode<synchronous>, transform_indices = @transform_4, window_bounds = array<i64: 32, 1>}, {pipeline_mode = #tpu.pipeline_mode<synchronous>, transform_indices = @transform_5, window_bounds = array<i64: 32, 1>}, {transform_indices = @transform_6, window_bounds = array<i64: 1, 1>}, {transform_indices = @transform_7, window_bounds = array<i64: 1, 128>}]} {
    %c0 = arith.constant 0 : index
    %c0_0 = arith.constant 0 : index
    %0 = vector.load %arg1[%c0, %c0_0] : memref<1x128xf32, #tpu.memory_space<vmem>>, vector<1x128xf32>
    %c0_1 = arith.constant 0 : index
    %c0_2 = arith.constant 0 : index
    %1 = vector.load %arg2[%c0_1, %c0_2] : memref<32x1xf32, #tpu.memory_space<vmem>>, vector<32x1xf32>
    %2 = vector.broadcast %1 : vector<32x1xf32> to vector<32x128xf32>
    %3 = vector.broadcast %0 : vector<1x128xf32> to vector<32x128xf32>
    %4 = arith.mulf %2, %3 : vector<32x128xf32>
    %c0_3 = arith.constant 0 : index
    %c0_4 = arith.constant 0 : index
    %5 = vector.load %arg3[%c0_3, %c0_4] : memref<32x1xf32, #tpu.memory_space<vmem>>, vector<32x1xf32>
    %6 = vector.broadcast %5 : vector<32x1xf32> to vector<32x128xf32>
    %7 = arith.addf %4, %6 : vector<32x128xf32>
    %cst = arith.constant 0.000000e+00 : f32
    %8 = vector.broadcast %cst : f32 to vector<32x128xf32>
    %9 = arith.maximumf %7, %8 : vector<32x128xf32>
    %c0_5 = arith.constant 0 : index
    %c0_6 = arith.constant 0 : index
    %10 = vector.load %arg4[%c0_5, %c0_6] : memref<32x32xf32, #tpu.memory_space<vmem>>, vector<32x32xf32>
    %cst_7 = arith.constant dense<0.000000e+00> : vector<32x128xf32>
    %11 = tpu.matmul %10, %9, %cst_7 {dimension_numbers = #tpu.dot_dimension_numbers<[1], [0], [0], [1], [0, 0, 1, 1], [], []>, precision = #tpu.contract_precision<fp32>} : vector<32x32xf32>, vector<32x128xf32>, vector<32x128xf32> -> vector<32x128xf32>
    %c0_8 = arith.constant 0 : index
    %c0_9 = arith.constant 0 : index
    %12 = vector.load %arg5[%c0_8, %c0_9] : memref<32x1xf32, #tpu.memory_space<vmem>>, vector<32x1xf32>
    %13 = vector.broadcast %12 : vector<32x1xf32> to vector<32x128xf32>
    %14 = arith.addf %11, %13 : vector<32x128xf32>
    %cst_10 = arith.constant 0.000000e+00 : f32
    %15 = vector.broadcast %cst_10 : f32 to vector<32x128xf32>
    %16 = arith.maximumf %14, %15 : vector<32x128xf32>
    %c0_11 = arith.constant 0 : index
    %c0_12 = arith.constant 0 : index
    %17 = vector.load %arg6[%c0_11, %c0_12] : memref<32x1xf32, #tpu.memory_space<vmem>>, vector<32x1xf32>
    %18 = vector.broadcast %17 : vector<32x1xf32> to vector<32x128xf32>
    %19 = arith.mulf %16, %18 : vector<32x128xf32>
    %cst_13 = arith.constant dense<0.000000e+00> : vector<128xf32>
    %20 = vector.multi_reduction <add>, %19, %cst_13 [0] : vector<32x128xf32> to vector<128xf32>
    %21 = vector.shape_cast %20 : vector<128xf32> to vector<1x128xf32>
    %c0_14 = arith.constant 0 : index
    %c0_15 = arith.constant 0 : index
    %22 = memref.load %arg7[%c0_14, %c0_15] : memref<1x1xf32, #tpu.memory_space<smem>>
    %23 = vector.broadcast %22 : f32 to vector<1x128xf32>
    %24 = arith.addf %21, %23 : vector<1x128xf32>
    %c0_16 = arith.constant 0 : index
    %c0_17 = arith.constant 0 : index
    %25 = vector.load %arg8[%c0_16, %c0_17] : memref<1x128xf32, #tpu.memory_space<vmem>>, vector<1x128xf32>
    tpu.vector_store %arg8[%c0_16, %c0_17], %24 {strides = array<i32>} : memref<1x128xf32, #tpu.memory_space<vmem>>, vector<1x128xf32>,
    return
  }
  func.func @transform_0(%arg0: i32) -> (i32, i32) {
    %c0_i32 = arith.constant 0 : i32
    %c0_i32_0 = arith.constant 0 : i32
    return %c0_i32, %arg0 : i32, i32
  }
  func.func @transform_1(%arg0: i32) -> (i32, i32) {
    %c0_i32 = arith.constant 0 : i32
    %c0_i32_0 = arith.constant 0 : i32
    %c0_i32_1 = arith.constant 0 : i32
    return %c0_i32, %c0_i32_0 : i32, i32
  }
  func.func @transform_2(%arg0: i32) -> (i32, i32) {
    %c0_i32 = arith.constant 0 : i32
    %c0_i32_0 = arith.constant 0 : i32
    %c0_i32_1 = arith.constant 0 : i32
    return %c0_i32, %c0_i32_0 : i32, i32
  }
  func.func @transform_3(%arg0: i32) -> (i32, i32) {
    %c0_i32 = arith.constant 0 : i32
    %c0_i32_0 = arith.constant 0 : i32
    %c0_i32_1 = arith.constant 0 : i32
    return %c0_i32, %c0_i32_0 : i32, i32
  }
  func.func @transform_4(%arg0: i32) -> (i32, i32) {
    %c0_i32 = arith.constant 0 : i32
    %c0_i32_0 = arith.constant 0 : i32
    %c0_i32_1 = arith.constant 0 : i32
    return %c0_i32, %c0_i32_0 : i32, i32
  }
  func.func @transform_5(%arg0: i32) -> (i32, i32) {
    %c0_i32 = arith.constant 0 : i32
    %c0_i32_0 = arith.constant 0 : i32
    %c0_i32_1 = arith.constant 0 : i32
    return %c0_i32, %c0_i32_0 : i32, i32
  }
  func.func @transform_6(%arg0: i32) -> (i32, i32) {
    %c0_i32 = arith.constant 0 : i32
    %c0_i32_0 = arith.constant 0 : i32
    %c0_i32_1 = arith.constant 0 : i32
    return %c0_i32, %c0_i32_0 : i32, i32
  }
  func.func @transform_7(%arg0: i32) -> (i32, i32) {
    %c0_i32 = arith.constant 0 : i32
    %c0_i32_0 = arith.constant 0 : i32
    return %c0_i32, %arg0 : i32, i32
  }
}

</mosaic_0001>

<bundles_post_ra>
// kernel: tpu_custom_call.1
= control target key start
LH: loop header
LB: loop body
LE: loop exit
PB: predicated region body
PF: predicated region fallthrough
CT: control target
= control target key end

     0   :  { %v1042_v2 = vmov 0   ;;  %s1223_s0 = inlined_call_operand.vmem [shape: f32[1,128], index: 0, kind: input, shape index: {}]   ;;  %s1224_s1 = inlined_call_operand.vmem [shape: f32[32,1], index: 1, kind: input, shape index: {}]   ;;  %s1225_s2 = inlined_call_operand.vmem [shape: f32[32,1], index: 2, kind: input, shape index: {}]   ;;  %s1226_s3 = inlined_call_operand.vmem [shape: f32[32,32], index: 3, kind: input, shape index: {}]   ;;  %s1227_s4 = inlined_call_operand.vmem [shape: f32[32,1], index: 4, kind: input, shape index: {}]   ;;  %s1228_s5 = inlined_call_operand.vmem [shape: f32[32,1], index: 5, kind: input, shape index: {}]   ;;  %s1229_s6 = inlined_call_operand.<no memory space> [shape: f32[1,1], index: 6, kind: input, shape index: {}]   ;;  %s1230_s7 = inlined_call_operand.hbm [shape: f32[1,128], index: 7, kind: output, shape index: {}]  }
   0x1   :  { %v63_v0 = vld [vmem:[%s1225_s2] sm:$0xff]  ;;  %1017 = vset.pattern.permute.xlu1 %v1042_v2  ;;  %1016 = vset.pattern.permute.xlu0 %v1042_v2  ;;  %v64_v3 = vld [vmem:[%s1225_s2 + $0x8] sm:$0xff] }
   0x2   :  { %v29_v1 = vld [vmem:[%s1224_s1] sm:$0xff]  ;;  %69 = vperm.xlu1 %1017, %v63_v0   ;;  %v30_v4 = vld [vmem:[%s1224_s1 + $0x8] sm:$0xff] }
   0x3   :  { %35 = vperm.xlu0 %1016, %v29_v1  }
   0x4   :  { %13 = vsyncpa [#allocation4], 0  ;;  %v32_v5 = vld [vmem:[%s1224_s1 + $0x18] sm:$0xff]  ;;  %v31_v6 = vld [vmem:[%s1224_s1 + $0x10] sm:$0xff]  ;;  %vm123_vm0 = vcmask 261120   ;;  %s1043_s16 = smov [#allocation3]  }
   0x5   :  { %v66_v7 = vld [vmem:[%s1225_s2 + $0x18] sm:$0xff]  ;;  %v65_v8 = vld [vmem:[%s1225_s2 + $0x10] sm:$0xff]  ;;  %v95_v9 = vld [vmem:[%s1226_s3] sm:$0xff]  ;;  %s801_s17 = sshll.u32 %s1043_s16, 4  ;;  %s802_s17 = int_to_ptr.vmem [resolvable:$true] %s801_s17 }
   0x6   :  { %74 = vperm.xlu1 %1017, %v64_v3   ;;  %v100_v10 = vld [vmem:[%s1227_s4 + $0x8] sm:$0xff]  ;;  %v99_v11 = vld [vmem:[%s1227_s4] sm:$0xff]  ;;  %v125_v12 = vsel %vm123_vm0, %v95_v9, 0  ;;  %v102_v15 = vld [vmem:[%s1227_s4 + $0x18] sm:$0xff]  ;;  %s1018_s18 = scalar_lea.vmem %s802_s17, 16  ;;  %s1022_s19 = scalar_lea.vmem %s802_s17, 32 }
   0x7   :  { %40 = vperm.xlu0 %1016, %v30_v4   ;;  %v1118_v13 = vand.u32 4294901760, %v125_v12  ;;  %v101_v16 = vld [vmem:[%s1227_s4 + $0x10] sm:$0xff]  ;;  %v755_v19 = vld [vmem:[%s1228_s5 + $0x8] sm:$0xff]  ;;  %v754_v20 = vld [vmem:[%s1228_s5] sm:$0xff]  ;;  %p1019_p0 = scmp.ne.s32.totalorder %s802_s17, %s1018_s18  ;;  %p1023_p1 = scmp.lt.s32.totalorder %s802_s17, %s802_s17 }
   0x8   :  { %v757_v22 = vld [vmem:[%s1228_s5 + $0x18] sm:$0xff]  ;;  %v756_v23 = vld [vmem:[%s1228_s5 + $0x10] sm:$0xff]  ;;  %v809_v24 = vld [vmem:[%s1223_s0] ss:$0 sm:$0xff]  ;;  %p1024_p2 = scmp.lt.s32.totalorder %s1022_s19, %s1018_s18 }
   0x9   :  { %v1121_v14 = vsub.f32 %v125_v12, %v1118_v13  ;;  %v96_v25 = vld [vmem:[%s1226_s3 + $0x8] sm:$0xff]  ;;  %v97_v28 = vld [vmem:[%s1226_s3 + $0x10] sm:$0xff]  ;;  %v98_v31 = vld [vmem:[%s1226_s3 + $0x18] sm:$0xff] }
   0xa   :  { %50 = vperm.xlu1 %1017, %v32_v5   ;;  %v128_v30 = vsel %vm123_vm0, %v96_v25, 0  ;;  %v131_v33 = vsel %vm123_vm0, %v97_v28, 0  ;;  %v134_v39 = vsel %vm123_vm0, %v98_v31, 0  ;;  %p1025_p3 = por %p1024_p2, %p1023_p1 }
   0xb   :  { %45 = vperm.xlu0 %1016, %v31_v6   ;;  %v207_v17 = vand.u32 4294901760, %v1121_v14  ;;  %v1157_v36 = vand.u32 4294901760, %v128_v30  ;;  %v1160_v40 = vand.u32 4294901760, %v131_v33  ;;  %v1165_v46 = vand.u32 4294901760, %v134_v39 }
   0xc   :  { %p1026_p4 = pnand %p1025_p3, %p1019_p0 }
   0xd   :  { %v208_v18 = vsub.f32 %v1121_v14, %v207_v17  ;;  %908 = vmatprep.mubr.f32.mxu0 %v207_v17  ;;  %v1163_v45 = vsub.f32 %v128_v30, %v1157_v36  ;;  %v1170_v49 = vsub.f32 %v131_v33, %v1160_v40  ;;  %v1175_v57 = vsub.f32 %v134_v39, %v1165_v46 }
   0xe   :  { %84 = vperm.xlu1 %1017, %v66_v7  }
   0xf   :  { %79 = vperm.xlu0 %1016, %v65_v8   ;;  %v209_v21 = vand.u32 4294901760, %v208_v18  ;;  %v217_v56 = vand.u32 4294901760, %v1163_v45  ;;  %v227_v63 = vand.u32 4294901760, %v1170_v49  ;;  %v237_v4 = vand.u32 4294901760, %v1175_v57 }
  0x11   :  { %866 = vmatprep.mubr.f32.mxu1 %v209_v21  ;;  %v218_v3 = vsub.f32 %v1163_v45, %v217_v56  ;;  %v228_v9 = vsub.f32 %v1170_v49, %v227_v63  ;;  %v238_v17 = vsub.f32 %v1175_v57, %v237_v4 }
  0x12   :  { %110 = vperm.xlu1 %1017, %v100_v10  }
  0x13   :  { %105 = vperm.xlu0 %1016, %v99_v11  }
  0x16   :  { %120 = vperm.xlu1 %1017, %v102_v15  }
  0x17   :  { %115 = vperm.xlu0 %1016, %v101_v16   ;;  %v219_v16 = vand.u32 4294901760, %v218_v3 }
  0x1a   :  { %765 = vperm.xlu1 %1017, %v755_v19  }
  0x1b   :  { %760 = vperm.xlu0 %1016, %v754_v20  }
  0x1e   :  { %775 = vperm.xlu1 %1017, %v757_v22   ;;  %v229_v22 = vand.u32 4294901760, %v228_v9 }
  0x1f   :  { %770 = vperm.xlu0 %1016, %v756_v23  }
  0x81   :  { %v70_v26 = vpop.permute.xlu1 %69 }
  0x82   :  { %v36_v27 = vpop.permute.xlu0 %35 }
  0x83   :  { %v59_v29 = vmul.f32 %v809_v24, %v36_v27 }
  0x85   :  { %v87_v32 = vadd.f32 %v70_v26, %v59_v29  ;;  %v75_v34 = vpop.permute.xlu1 %74  ;;  %v239_v26 = vand.u32 4294901760, %v238_v17 }
  0x86   :  { %v41_v35 = vpop.permute.xlu0 %40 }
  0x87   :  { %v91_v37 = vmax.f32 %v87_v32, 0.0  ;;  %v60_v38 = vmul.f32 %v809_v24, %v41_v35 }
  0x89   :  { %v137_v41 = vand.u32 4294901760, %v91_v37  ;;  %v88_v42 = vadd.f32 %v75_v34, %v60_v38  ;;  %v51_v43 = vpop.permute.xlu1 %50 }
  0x8a   :  { %v46_v44 = vpop.permute.xlu0 %45  ;;  %v62_v51 = vmul.f32 %v809_v24, %v51_v43 }
  0x8b   :  { %v1167_v47 = vsub.f32 %v91_v37, %v137_v41  ;;  %v92_v48 = vmax.f32 %v88_v42, 0.0  ;;  %v61_v52 = vmul.f32 %v809_v24, %v46_v44 }
  0x8d   :  { %v140_v50 = vand.u32 4294901760, %v92_v48  ;;  %v248_v53 = vand.u32 4294901760, %v1167_v47  ;;  %v85_v54 = vpop.permute.xlu1 %84 }
  0x8e   :  { %v80_v55 = vpop.permute.xlu0 %79  ;;  %v90_v60 = vadd.f32 %v85_v54, %v62_v51 }
  0x8f   :  { %v1177_v58 = vpack.c.bf16 %v140_v50, %v137_v41  ;;  %v254_v59 = vsub.f32 %v92_v48, %v140_v50  ;;  %v89_v61 = vadd.f32 %v80_v55, %v61_v52  ;;  %v249_v62 = vsub.f32 %v1167_v47, %v248_v53 }
  0x90   :  { %v94_v0 = vmax.f32 %v90_v60, 0.0 }
  0x91   :  { %v93_v1 = vmax.f32 %v89_v61, 0.0  ;;  %943 = vmatprep.subr.bf16.mxu1 %v1177_v58  ;;  %967 = vmatprep.subr.bf16.mxu0 %v1177_v58  ;;  %v255_v2 = vand.u32 4294901760, %v254_v59  ;;  %v250_v8 = vand.u32 4294901760, %v249_v62  ;;  %v958_v30 = vpack.c.bf16 %v254_v59, %v1167_v47  ;;  %v111_v33 = vpop.permute.xlu1 %110 }
  0x92   :  { %945 = vmatpush3.bf16.msra.mxu1 %v1177_v58  ;;  %969 = vmatpush3.bf16.msra.mxu0 %v1177_v58  ;;  %v146_v5 = vand.u32 4294901760, %v94_v0  ;;  %v106_v32 = vpop.permute.xlu0 %105 }
  0x93   :  { %v143_v6 = vand.u32 4294901760, %v93_v1  ;;  %v256_v7 = vsub.f32 %v254_v59, %v255_v2  ;;  %v974_v19 = vpack.c.bf16 %v255_v2, %v248_v53 }
  0x94   :  { %v268_v10 = vsub.f32 %v94_v0, %v146_v5 }
  0x95   :  { %v946_v11 = vpack.c.bf16 %v146_v5, %v143_v6  ;;  %v261_v12 = vsub.f32 %v93_v1, %v143_v6  ;;  %v257_v15 = vand.u32 4294901760, %v256_v7  ;;  %v121_v35 = vpop.permute.xlu1 %120  ;;  %v792_v6 = vstv %s1229_s6 }
  0x96   :  { %v269_v21 = vand.u32 4294901760, %v268_v10  ;;  %v116_v34 = vpop.permute.xlu0 %115 }
  0x97   :  { %947 = vmatprep.subr.bf16.mxu1 %v946_v11  ;;  %971 = vmatprep.subr.bf16.mxu0 %v946_v11  ;;  %v950_v18 = vpack.c.bf16 %v257_v15, %v250_v8  ;;  %v262_v20 = vand.u32 4294901760, %v261_v12  ;;  %v962_v31 = vpack.c.bf16 %v268_v10, %v261_v12 }
  0x98   :  { %949 = vmatpush3.bf16.msra.mxu1 %v946_v11  ;;  %973 = vmatpush3.bf16.msra.mxu0 %v946_v11  ;;  %v270_v24 = vsub.f32 %v268_v10, %v269_v21 }
  0x99   :  { %951 = vmatprep.subr.bf16.mxu1 %v950_v18  ;;  %975 = vmatprep.subr.bf16.mxu0 %v974_v19  ;;  %v263_v23 = vsub.f32 %v261_v12, %v262_v20  ;;  %v978_v25 = vpack.c.bf16 %v269_v21, %v262_v20 }
  0x9a   :  { %v271_v28 = vand.u32 4294901760, %v270_v24 }
  0x9b   :  { %867 = vmatmul.mubr.f32.vlgmr.msra.gmra.mrb[0].mxu1 %v219_v16  ;;  %909 = vmatmul.mubr.f32.vlgmr.msra.gmra.mrb[0].mxu0 %v217_v56  ;;  %v264_v27 = vand.u32 4294901760, %v263_v23 }
  0x9c   :  { %953 = vmatpush3.bf16.msra.mxu1 %v950_v18  ;;  %977 = vmatpush3.bf16.msra.mxu0 %v974_v19 }
  0x9d   :  { %979 = vmatprep.subr.bf16.mxu0 %v978_v25  ;;  %869 = vmatprep.mubr.f32.mxu1 %v229_v22  ;;  %v954_v29 = vpack.c.bf16 %v271_v28, %v264_v27 }
  0x9e   :  { %911 = vmatprep.mubr.f32.mxu0 %v227_v63 }
  0x9f   :  { %870 = vmatmul.mubr.f32.gmra.mrb[2].mxu1 %v239_v26  ;;  %955 = vmatprep.subr.bf16.mxu1 %v954_v29 }
  0xa0   :  { %912 = vmatmul.mubr.f32.gmra.mrb[2].mxu0 %v237_v4  ;;  %957 = vmatpush3.bf16.msra.mxu1 %v954_v29 }
  0xa1   :  { %981 = vmatpush3.bf16.msra.mxu0 %v978_v25  ;;  %959 = vmatprep.subr.bf16.mxu1 %v958_v30 }
  0xa2   :  { %983 = vmatprep.subr.bf16.mxu0 %v1177_v58  ;;  %880 = vmatprep.mubr.f32.mxu1 %v1118_v13 }
  0xa3   :  { %922 = vmatprep.mubr.f32.mxu0 %v1118_v13  ;;  %881 = vmatmul.mubr.f32.vlgmr.msra.gmra.mrb[0].mxu1 %v1157_v36 }
  0xa4   :  { %923 = vmatmul.mubr.f32.vlgmr.msra.gmra.mrb[0].mxu0 %v1157_v36  ;;  %961 = vmatpush3.bf16.msra.mxu1 %v958_v30 }
  0xa5   :  { %985 = vmatpush3.bf16.msra.mxu0 %v1177_v58  ;;  %963 = vmatprep.subr.bf16.mxu1 %v962_v31 }
  0xa6   :  { %987 = vmatprep.subr.bf16.mxu0 %v946_v11  ;;  %883 = vmatprep.mubr.f32.mxu1 %v1160_v40 }
  0xa7   :  { %925 = vmatprep.mubr.f32.mxu0 %v1160_v40  ;;  %884 = vmatmul.mubr.f32.gmra.mrb[2].mxu1 %v1165_v46 }
  0xa8   :  { %926 = vmatmul.mubr.f32.gmra.mrb[2].mxu0 %v1165_v46  ;;  %965 = vmatpush3.bf16.msra.mxu1 %v962_v31 }
  0xa9   :  { %989 = vmatpush3.bf16.msra.mxu0 %v946_v11  ;;  %894 = vmatprep.mubr.f32.mxu1 %v1121_v14 }
  0xaa   :  { %936 = vmatprep.mubr.f32.mxu0 %v1118_v13 }
  0xab   :  { %895 = vmatmul.mubr.f32.vlgmr.msra.gmra.mrb[0].mxu1 %v1163_v45 }
  0xac   :  { %937 = vmatmul.mubr.f32.vlgmr.msra.gmra.mrb[0].mxu0 %v1157_v36  ;;  %897 = vmatprep.mubr.f32.mxu1 %v1170_v49  ;;  %v761_v36 = vpop.permute.xlu0 %760  ;;  %v766_v49 = vpop.permute.xlu1 %765 }
  0xad   :  { %939 = vmatprep.mubr.f32.mxu0 %v1160_v40 }
  0xaf   :  { %898 = vmatmul.mubr.f32.gmra.mrb[2].mxu1 %v1175_v57 }
  0xb0   :  { %940 = vmatmul.mubr.f32.gmra.mrb[2].mxu0 %v1165_v46  ;;  %v771_v59 = vpop.permute.xlu0 %770  ;;  %v776_v61 = vpop.permute.xlu1 %775 }
 0x17e   :  { %v896_v37 = vpop.f32.mrb[0].mxu1 }
 0x17f   :  { %v990_v14 = vadd.f32 %v896_v37, %v111_v33  ;;  %v938_v38 = vpop.f32.mrb[0].mxu0  ;;  %v430_v13 = vpop.f32.mrb[1].mxu1 }
 0x180   :  { %v992_v39 = vadd.f32 %v430_v13, %v106_v32  ;;  %v728_v41 = vpop.f32.mrb[1].mxu0 }
 0x181   :  { %v991_v42 = vadd.f32 %v990_v14, %v938_v38 }
 0x182   :  { %v993_v43 = vadd.f32 %v992_v39, %v728_v41  ;;  %v899_v44 = vpop.f32.mrb[2].mxu1 }
 0x183   :  { %v751_v45 = vmax.f32 %v991_v42, 0.0  ;;  %v994_v40 = vadd.f32 %v899_v44, %v121_v35  ;;  %v941_v47 = vpop.f32.mrb[2].mxu0  ;;  %v444_v48 = vpop.f32.mrb[3].mxu1 }
 0x184   :  { %v750_v46 = vmax.f32 %v993_v43, 0.0  ;;  %v996_v50 = vadd.f32 %v444_v48, %v116_v34  ;;  %v740_v51 = vpop.f32.mrb[3].mxu0 }
 0x185   :  { %v779_v52 = vmul.f32 %v766_v49, %v751_v45  ;;  %v995_v53 = vadd.f32 %v994_v40, %v941_v47 }
 0x186   :  { %v778_v54 = vmul.f32 %v761_v36, %v750_v46  ;;  %v997_v55 = vadd.f32 %v996_v50, %v740_v51 }
 0x187   :  { %v753_v57 = vmax.f32 %v995_v53, 0.0 }
 0x188   :  { %v782_v56 = vadd.f32 %v779_v52, %v778_v54  ;;  %v752_v58 = vmax.f32 %v997_v55, 0.0 }
 0x189   :  { %v781_v62 = vmul.f32 %v776_v61, %v753_v57 }
 0x18a   :  { %v780_v60 = vmul.f32 %v771_v59, %v752_v58 }
 0x18c   :  { %v783_v63 = vadd.f32 %v782_v56, %v780_v60 }
 0x18e   :  { %v784_v0 = vadd.f32 %v783_v63, %v781_v62 }
 0x190   :  { %v785_v1 = vrot.slane %v784_v0, 4 }
 0x192   :  { %v786_v2 = vadd.f32 %v785_v1, %v784_v0 }
 0x194   :  { %v787_v3 = vrot.slane %v786_v2, 2 }
 0x196   :  { %v788_v4 = vadd.f32 %v787_v3, %v786_v2 }
 0x198   :  { %v789_v5 = vrot.slane %v788_v4, 1 }
 0x19a   :  { %v790_v7 = vadd.f32 %v789_v5, %v788_v4 }
 0x19c   :  { %v793_v8 = vadd.f32 %v792_v6, %v790_v7 }
 0x19e   :  { %794 = vst [vmem:[#allocation3] sm:$0x1] %v793_v8 }
 0x19f   :  { %1029 = shalt.err (!%p1026_p4)
}
 0x1a0   :  { %s1030_s21 = scalar_lea.hbm %s1230_s7, 16 }
 0x1a1   :  { %p1031_p5 = scmp.ne.s32.totalorder %s1230_s7, %s1030_s21  ;;  %p1034_p6 = scmp.lt.u32.totalorder %s1030_s21, %s1230_s7 }
 0x1a3   :  { %p1036_p7 = pnand %p1034_p6, %p1031_p5 }
 0x1a5   :  { %1039 = shalt.err (!%p1036_p7)
}
 0x1a6   :  { %804 = dma.vmem_to_hbm [thread:$0]  %s802_s17, 16, %s1230_s7, [#allocation4]  }
 0x1a7   :  { %1040 = dma.done.wait [#allocation4], 16  }
 0x1a8   :  { %1041 = vsyncadd [#allocation4], 4294967280 }
 0x1a9   :  { %808 = vsyncpa [#allocation4], 1 }

</bundles_post_ra>
